<compile_context>
chip_gen: v5e
topology: v5e:2x2
jax: 0.10.0
libtpu: 0.0.40
codegen_flags: <defaults>
</compile_context>

<pallas_src>
import jax
import jax.numpy as jnp
from jax.experimental import pallas as pl
from jax.experimental.pallas import tpu as pltpu


def _round_up(x, m):
    return (x + m - 1) // m * m


def protonet_kernel(tags2t_ref, ntagsq_ref, words_ref, ww_ref, bw_ref,
                    logp_ref, p_ref):
    # ---- Words projection on the MXU (inputs may be bf16; f32 accumulation,
    # bias added post-accumulation in f32). ----
    words_metric = jnp.dot(words_ref[...], ww_ref[...],
                           preferred_element_type=jnp.float32) + bw_ref[...]

    # ---- logits[i, j] = 2 * w_i . t_j - ||t_j||^2  (== -distance + c(i)).
    # The 2x scale and the -1e30 mask on padded tag columns are baked into the
    # precomputed operands; ||w_i||^2 cancels under softmax and is dropped. ----
    tags2t = tags2t_ref[...]                       # (mdim_pad, n_tags_pad)
    logits = jnp.dot(words_metric.astype(tags2t.dtype), tags2t,
                     preferred_element_type=jnp.float32) + ntagsq_ref[...]

    # ---- Numerically stable softmax / log_softmax over the tag (lane) axis.
    # Single exp pass (EUP); reciprocal on EUP; multiply on VPU. ----
    m = jnp.max(logits, axis=1, keepdims=True)
    z = logits - m
    e = jnp.exp(z)
    denom = jnp.sum(e, axis=1, keepdims=True)
    logp_ref[...] = (z - jnp.log(denom)).astype(logp_ref.dtype)
    p_ref[...] = (e * pl.reciprocal(denom, approx=True)).astype(p_ref.dtype)


def _choose_tile_w(n_words, n_tags_pad, bdim, mdim_pad, in_bytes, out_bytes):
    # Budget kept well under v7x's 64 MiB physical VMEM (v5e/v6e have 128 MiB).
    budget = 28 * 1024 * 1024
    resident = 2 * (mdim_pad * n_tags_pad * in_bytes + n_tags_pad * 4
                    + bdim * mdim_pad * in_bytes + mdim_pad * 4)
    # Per words-row bytes: double-buffered input tile + double-buffered outputs
    # + in-kernel f32 intermediates (words_metric, logits/z, e).
    per_row = (2 * (bdim * in_bytes + 2 * n_tags_pad * out_bytes)
               + 4 * (mdim_pad + 2 * n_tags_pad))
    tw = (budget - resident) // max(per_row, 1)
    # Keep the grid at >= 2 steps so "parallel" sharding can use both v7x
    # TensorCores (harmless on single-TC v5e/v6e).
    tw = min(tw, _round_up(pl.cdiv(max(n_words, 1), 2), 8))
    tw = max(8, min(int(tw), 2048))
    return _round_up(tw, 8)


def protonet_forward(tags_embed, words_embed, params, *, prediction=True,
                     compute_dtype=jnp.bfloat16, tile_w=None):
    """ProtoNet forward. prediction=True returns (log_pred_y, pred_y)."""
    n_tags, bdim = tags_embed.shape
    n_words, bdim_w = words_embed.shape
    assert bdim == bdim_w
    mdim = params["wt"].shape[1]
    f32 = jnp.float32

    # --- Tag-side projection hoisted out of the grid loop (tiny XLA matmul). ---
    tags_metric = tags_embed.astype(f32) @ params["wt"].astype(f32) \
        + params["bt"].astype(f32)                                   # (n_tags, mdim)

    if not prediction:
        # TODO(synk): prediction=False branch returns the raw projections via
        # plain XLA matmuls (too small to benefit from a Pallas kernel).
        words_metric = words_embed.astype(f32) @ params["ww"].astype(f32) \
            + params["bw"].astype(f32)
        return tags_metric, words_metric

    cd = jnp.dtype(compute_dtype)
    out_dtype = jnp.bfloat16 if cd == jnp.bfloat16 else jnp.float32

    # Lane-dense padding: tag axis and mdim to multiples of 128 (zero pads are
    # exact; padded tag columns are masked via neg_tag_sq = -1e30).
    n_tags_pad = _round_up(max(n_tags, 1), 128)
    mdim_pad = _round_up(mdim, 128)

    # Precomputed, resident tag operands (2x scale + pad mask baked in).
    tags2t = jnp.zeros((mdim_pad, n_tags_pad), cd).at[:mdim, :n_tags].set(
        (2.0 * tags_metric).T.astype(cd))
    neg_tag_sq = jnp.full((1, n_tags_pad), -1e30, f32).at[0, :n_tags].set(
        -jnp.sum(tags_metric * tags_metric, axis=1))

    # Words-side weights (mdim zero-padded; bias stays f32).
    ww = jnp.zeros((bdim, mdim_pad), cd).at[:, :mdim].set(params["ww"].astype(cd))
    bw = jnp.zeros((1, mdim_pad), f32).at[:, :mdim].set(params["bw"].astype(f32))

    # Words-axis tiling.
    in_bytes = cd.itemsize
    out_bytes = jnp.dtype(out_dtype).itemsize
    if tile_w is None:
        tile_w = _choose_tile_w(n_words, n_tags_pad, bdim, mdim_pad,
                                in_bytes, out_bytes)
    tw = _round_up(min(int(tile_w), _round_up(max(n_words, 1), 8)), 8)
    n_words_pad = _round_up(max(n_words, 1), tw)
    words_p = jnp.pad(words_embed.astype(cd),
                      ((0, n_words_pad - n_words), (0, 0)))

    grid_spec = pltpu.PrefetchScalarGridSpec(
        num_scalar_prefetch=0,
        grid=(n_words_pad // tw,),
        in_specs=[
            pl.BlockSpec((mdim_pad, n_tags_pad), lambda i: (0, 0)),  # tags2t (resident)
            pl.BlockSpec((1, n_tags_pad), lambda i: (0, 0)),         # -||t||^2 (resident)
            pl.BlockSpec((tw, bdim), lambda i: (i, 0)),              # words tile
            pl.BlockSpec((bdim, mdim_pad), lambda i: (0, 0)),        # ww (resident)
            pl.BlockSpec((1, mdim_pad), lambda i: (0, 0)),           # bw (resident)
        ],
        out_specs=[
            pl.BlockSpec((tw, n_tags_pad), lambda i: (i, 0)),        # log_pred_y
            pl.BlockSpec((tw, n_tags_pad), lambda i: (i, 0)),        # pred_y
        ],
    )
    out_shape = (
        jax.ShapeDtypeStruct((n_words_pad, n_tags_pad), out_dtype),
        jax.ShapeDtypeStruct((n_words_pad, n_tags_pad), out_dtype),
    )
    logp, p = pl.pallas_call(
        protonet_kernel,
        grid_spec=grid_spec,
        out_shape=out_shape,
        compiler_params=pltpu.CompilerParams(
            dimension_semantics=("parallel",),
            vmem_limit_bytes=48 * 1024 * 1024,
        ),
    )(tags2t, neg_tag_sq, words_p, ww, bw)

    return logp[:n_words, :n_tags], p[:n_words, :n_tags]


def init_params(key, mdim, bdim):
    """Deterministic init matching nn.Linear shapes.

    PyTorch Linear weight is (mdim, bdim); stored transposed as (bdim, mdim)
    so projections are x @ W_t + b.  Biases stored as (1, mdim).
    """
    k1, k2, k3, k4 = jax.random.split(key, 4)
    bound = 1.0 / jnp.sqrt(bdim)
    wt = jax.random.uniform(k1, (bdim, mdim), jnp.float32, -bound, bound)
    bt = jax.random.uniform(k2, (1, mdim), jnp.float32, -bound, bound)
    ww = jax.random.uniform(k3, (bdim, mdim), jnp.float32, -bound, bound)
    bw = jax.random.uniform(k4, (1, mdim), jnp.float32, -bound, bound)
    return {"wt": wt, "bt": bt, "ww": ww, "bw": bw}


def protonet_reference(tags_embed, words_embed, params):
    """Pure-JAX reference mirroring the PyTorch module exactly (f32)."""
    tags_metric = tags_embed @ params["wt"] + params["bt"]
    words_metric = words_embed @ params["ww"] + params["bw"]
    diff = words_metric[:, None, :] - tags_metric[None, :, :]
    distances = jnp.sum(diff * diff, axis=2)
    return jax.nn.log_softmax(-distances, axis=1), jax.nn.softmax(-distances, axis=1)


if __name__ == "__main__":
    mdim, bdim = 32, 64
    n_tags, n_words = 10, 200

    key = jax.random.PRNGKey(0)
    k_params, k_tags, k_words = jax.random.split(key, 3)

    params = init_params(k_params, mdim, bdim)
    tags_embed = jax.random.normal(k_tags, (n_tags, bdim), jnp.float32)
    words_embed = jax.random.normal(k_words, (n_words, bdim), jnp.float32)

    ref_logp, ref_p = protonet_reference(tags_embed, words_embed, params)

    # --- f32 compute path, multi-step grid (tile_w=64 -> 4 grid steps) ---
    logp32, p32 = protonet_forward(tags_embed, words_embed, params,
                                   compute_dtype=jnp.float32, tile_w=64)
    jax.block_until_ready((logp32, p32))
    assert logp32.shape == (n_words, n_tags) and p32.shape == (n_words, n_tags)
    assert jnp.allclose(logp32, ref_logp, atol=5e-4, rtol=5e-4)
    assert jnp.allclose(p32, ref_p, atol=5e-3, rtol=5e-3)
    assert jnp.allclose(jnp.sum(p32, axis=1), 1.0, atol=5e-3)

    # --- bf16 MXU path (default): auto tile, bf16 stores; looser tolerances ---
    logpbf, pbf = protonet_forward(tags_embed, words_embed, params)
    jax.block_until_ready((logpbf, pbf))
    assert logpbf.shape == (n_words, n_tags) and pbf.shape == (n_words, n_tags)
    assert logpbf.dtype == jnp.bfloat16 and pbf.dtype == jnp.bfloat16
    assert jnp.allclose(logpbf.astype(jnp.float32), ref_logp, atol=3e-1, rtol=1e-1)
    assert jnp.allclose(pbf.astype(jnp.float32), ref_p, atol=1e-1, rtol=1e-1)
    assert jnp.allclose(jnp.sum(pbf.astype(jnp.float32), axis=1), 1.0, atol=2e-2)

    # --- prediction=False branch (raw projections) ---
    tm, wm = protonet_forward(tags_embed, words_embed, params, prediction=False)
    jax.block_until_ready((tm, wm))
    assert tm.shape == (n_tags, mdim) and wm.shape == (n_words, mdim)

    print("KERNEL_OK")
</pallas_src>

<mosaic_0001>
module attributes {stable_mosaic.version = 11 : i64} {
  func.func @protonet_kernel(%arg0: i32, %arg1: memref<128x128xf32, #tpu.memory_space<vmem>>, %arg2: memref<1x128xf32, #tpu.memory_space<vmem>>, %arg3: memref<64x64xf32, #tpu.memory_space<vmem>>, %arg4: memref<64x128xf32, #tpu.memory_space<vmem>>, %arg5: memref<1x128xf32, #tpu.memory_space<vmem>>, %arg6: memref<64x128xf32, #tpu.memory_space<vmem>>, %arg7: memref<64x128xf32, #tpu.memory_space<vmem>>) attributes {dimension_semantics = [#tpu.dimension_semantics<parallel>], iteration_bounds = array<i64: 4>, scalar_prefetch = 0 : i64, scratch_operands = 0 : i64, tpu.core_type = #tpu.core_type<tc>, window_params = [{pipeline_mode = #tpu.pipeline_mode<synchronous>, transform_indices = @transform_0, window_bounds = array<i64: 128, 128>}, {pipeline_mode = #tpu.pipeline_mode<synchronous>, transform_indices = @transform_1, window_bounds = array<i64: 1, 128>}, {transform_indices = @transform_2, window_bounds = array<i64: 64, 64>}, {pipeline_mode = #tpu.pipeline_mode<synchronous>, transform_indices = @transform_3, window_bounds = array<i64: 64, 128>}, {pipeline_mode = #tpu.pipeline_mode<synchronous>, transform_indices = @transform_4, window_bounds = array<i64: 1, 128>}, {transform_indices = @transform_5, window_bounds = array<i64: 64, 128>}, {transform_indices = @transform_6, window_bounds = array<i64: 64, 128>}]} {
    %c0 = arith.constant 0 : index
    %c0_0 = arith.constant 0 : index
    %0 = vector.load %arg3[%c0, %c0_0] : memref<64x64xf32, #tpu.memory_space<vmem>>, vector<64x64xf32>
    %c0_1 = arith.constant 0 : index
    %c0_2 = arith.constant 0 : index
    %1 = vector.load %arg4[%c0_1, %c0_2] : memref<64x128xf32, #tpu.memory_space<vmem>>, vector<64x128xf32>
    %cst = arith.constant dense<0.000000e+00> : vector<64x128xf32>
    %2 = tpu.matmul %0, %1, %cst {dimension_numbers = #tpu.dot_dimension_numbers<[1], [0], [0], [1], [0, 0, 1, 1], [], []>} : vector<64x64xf32>, vector<64x128xf32>, vector<64x128xf32> -> vector<64x128xf32>
    %c0_3 = arith.constant 0 : index
    %c0_4 = arith.constant 0 : index
    %3 = vector.load %arg5[%c0_3, %c0_4] : memref<1x128xf32, #tpu.memory_space<vmem>>, vector<1x128xf32>
    %4 = vector.broadcast %3 : vector<1x128xf32> to vector<64x128xf32>
    %5 = arith.addf %2, %4 : vector<64x128xf32>
    %c0_5 = arith.constant 0 : index
    %c0_6 = arith.constant 0 : index
    %6 = vector.load %arg1[%c0_5, %c0_6] : memref<128x128xf32, #tpu.memory_space<vmem>>, vector<128x128xf32>
    %cst_7 = arith.constant dense<0.000000e+00> : vector<64x128xf32>
    %7 = tpu.matmul %5, %6, %cst_7 {dimension_numbers = #tpu.dot_dimension_numbers<[1], [0], [0], [1], [0, 0, 1, 1], [], []>} : vector<64x128xf32>, vector<128x128xf32>, vector<64x128xf32> -> vector<64x128xf32>
    %c0_8 = arith.constant 0 : index
    %c0_9 = arith.constant 0 : index
    %8 = vector.load %arg2[%c0_8, %c0_9] : memref<1x128xf32, #tpu.memory_space<vmem>>, vector<1x128xf32>
    %9 = vector.broadcast %8 : vector<1x128xf32> to vector<64x128xf32>
    %10 = arith.addf %7, %9 : vector<64x128xf32>
    %cst_10 = arith.constant dense<0xFF800000> : vector<64xf32>
    %11 = vector.multi_reduction <maximumf>, %10, %cst_10 [1] : vector<64x128xf32> to vector<64xf32>
    %12 = vector.shape_cast %11 : vector<64xf32> to vector<64x1xf32>
    %13 = vector.broadcast %12 : vector<64x1xf32> to vector<64x128xf32>
    %14 = arith.subf %10, %13 : vector<64x128xf32>
    %15 = math.exp %14 : vector<64x128xf32>
    %cst_11 = arith.constant dense<0.000000e+00> : vector<64xf32>
    %16 = vector.multi_reduction <add>, %15, %cst_11 [1] : vector<64x128xf32> to vector<64xf32>
    %17 = vector.shape_cast %16 : vector<64xf32> to vector<64x1xf32>
    %18 = math.log %17 : vector<64x1xf32>
    %19 = vector.broadcast %18 : vector<64x1xf32> to vector<64x128xf32>
    %20 = arith.subf %14, %19 : vector<64x128xf32>
    %c0_12 = arith.constant 0 : index
    %c0_13 = arith.constant 0 : index
    %21 = vector.load %arg6[%c0_12, %c0_13] : memref<64x128xf32, #tpu.memory_space<vmem>>, vector<64x128xf32>
    tpu.vector_store %arg6[%c0_12, %c0_13], %20 {strides = array<i32>} : memref<64x128xf32, #tpu.memory_space<vmem>>, vector<64x128xf32>,
    %22 = tpu.reciprocal %17 {approx = true} : vector<64x1xf32> -> vector<64x1xf32>
    %23 = vector.broadcast %22 : vector<64x1xf32> to vector<64x128xf32>
    %24 = arith.mulf %15, %23 : vector<64x128xf32>
    %c0_14 = arith.constant 0 : index
    %c0_15 = arith.constant 0 : index
    %25 = vector.load %arg7[%c0_14, %c0_15] : memref<64x128xf32, #tpu.memory_space<vmem>>, vector<64x128xf32>
    tpu.vector_store %arg7[%c0_14, %c0_15], %24 {strides = array<i32>} : memref<64x128xf32, #tpu.memory_space<vmem>>, vector<64x128xf32>,
    return
  }
  func.func @transform_0(%arg0: i32) -> (i32, i32) {
    %c0_i32 = arith.constant 0 : i32
    %c0_i32_0 = arith.constant 0 : i32
    %c0_i32_1 = arith.constant 0 : i32
    return %c0_i32, %c0_i32_0 : i32, i32
  }
  func.func @transform_1(%arg0: i32) -> (i32, i32) {
    %c0_i32 = arith.constant 0 : i32
    %c0_i32_0 = arith.constant 0 : i32
    %c0_i32_1 = arith.constant 0 : i32
    return %c0_i32, %c0_i32_0 : i32, i32
  }
  func.func @transform_2(%arg0: i32) -> (i32, i32) {
    %c0_i32 = arith.constant 0 : i32
    %c0_i32_0 = arith.constant 0 : i32
    return %arg0, %c0_i32 : i32, i32
  }
  func.func @transform_3(%arg0: i32) -> (i32, i32) {
    %c0_i32 = arith.constant 0 : i32
    %c0_i32_0 = arith.constant 0 : i32
    %c0_i32_1 = arith.constant 0 : i32
    return %c0_i32, %c0_i32_0 : i32, i32
  }
  func.func @transform_4(%arg0: i32) -> (i32, i32) {
    %c0_i32 = arith.constant 0 : i32
    %c0_i32_0 = arith.constant 0 : i32
    %c0_i32_1 = arith.constant 0 : i32
    return %c0_i32, %c0_i32_0 : i32, i32
  }
  func.func @transform_5(%arg0: i32) -> (i32, i32) {
    %c0_i32 = arith.constant 0 : i32
    %c0_i32_0 = arith.constant 0 : i32
    return %arg0, %c0_i32 : i32, i32
  }
  func.func @transform_6(%arg0: i32) -> (i32, i32) {
    %c0_i32 = arith.constant 0 : i32
    %c0_i32_0 = arith.constant 0 : i32
    return %arg0, %c0_i32 : i32, i32
  }
}

</mosaic_0001>

<bundles_post_ra>
// kernel: tpu_custom_call.1
= control target key start
LH: loop header
LB: loop body
LE: loop exit
PB: predicated region body
PF: predicated region fallthrough
CT: control target
= control target key end

     0   :  { %s1231_s0 = inlined_call_operand.vmem [shape: f32[128,128], index: 0, kind: input, shape index: {}]   ;;  %s1232_s1 = inlined_call_operand.vmem [shape: f32[1,128], index: 1, kind: input, shape index: {}]   ;;  %s1233_s2 = inlined_call_operand.vmem [shape: f32[256,64], index: 2, kind: input, shape index: {}]   ;;  %s1234_s3 = inlined_call_operand.vmem [shape: f32[64,128], index: 3, kind: input, shape index: {}]   ;;  %s1235_s4 = inlined_call_operand.vmem [shape: f32[1,128], index: 4, kind: input, shape index: {}]   ;;  %s1236_s5 = inlined_call_operand.hbm [shape: f32[256,128], index: 5, kind: output, shape index: {0}]   ;;  %s1237_s6 = inlined_call_operand.hbm [shape: f32[256,128], index: 6, kind: output, shape index: {1}]  }
   0x1   :  { %1238 = sst [smem:[#allocation8_spill]] %s1231_s0 }
   0x2   :  { %12 = vsyncpa [#allocation3], 0 }
   0x3   :  { %14 = vsyncpa [#allocation3 + $0x1], 0 }
   0x4   :  { %15 = vsyncpa [#allocation5], 0 }
   0x5   :  { %17 = vsyncpa [#allocation5 + $0x1], 0  ;;  %s952_s21 = smov 0   ;;  %s954_s22 = smov 0  }
   0x6   :  { %s956_s23 = smov 0   ;;  %s958_s24 = smov 0  }
   0x7 LB: > { %s973_s25 = sadd.s32 4294967295, %s913_s24   ;;  %s657_s26 = sadd.s32 4294967294, %s913_s24   ;;  %s913_s24 = sphi %s958_s24, %s1245_s24   ;;  %s909_s23 = sphi %s956_s23, %s1244_s23   ;;  %s905_s22 = sphi %s954_s22, %s1243_s22   ;;  %s901_s21 = sphi %s952_s21, %s1242_s21  }
   0x8   : > { %s977_s27 = sadd.s32 1, %s913_s24   ;;  %s140_s28 = sadd.s32 1, %s909_s23 }
   0x9   : > { %s137_s29 = ssub.s32 %s913_s24, %s977_s27  ;;  %p150_p0 = scmp.ne.s32.totalorder %s909_s23, %s905_s22 }
   0xa   : > { %p138_p1 = scmp.eq.s32.totalorder %s137_s29, 0  ;;  %p151_p2 = scmp.eq.s32.totalorder %s973_s25, 3 }
   0xb   : > { %p156_p3 = scmp.ne.s32.totalorder %s905_s22, %s901_s21  ;;  %p157_p4 = scmp.eq.s32.totalorder %s657_s26, 3 }
   0xc   : > { %s988_s30 = scalar_select %p138_p1, %s909_s23, %s140_s28  }
   0xd   : > { %p990_p5 = por %p151_p2, %p150_p0  ;;  %p994_p6 = por %p157_p4, %p156_p3 }
   0xe   : > { %p660_p7 = scmp.ge.s32.totalorder %s913_s24, 1  ;;  %p222_p8 = scmp.lt.s32.totalorder %s913_s24, 5 }
  0x10   : > { %p223_p9 = pnand %p660_p7, %p222_p8 }
  0x11   : > { %s663_s13 = sshll.u32 (!%p223_p9), %s973_s25, 3  ;;  %s1241_s0 = sld [smem:[#allocation8_spill]] (!%p223_p9) }
  0x12   : > { %226 = sbr.rel (%p223_p9) target bundleno = 619 (0x26b), region = 40  ;;  %p258_p10 = scmp.lt.s32.totalorder (!%p223_p9), %s663_s13, 31 }
  0x13   : > { %s1140_s28 = sand.u32 (!%p223_p9), 1, %s905_s22   ;;  %s681_s11 = sshll.u32 (!%p223_p9), %s973_s25, 6 }
  0x14   : > { %s661_s29 = sshll.u32 (!%p223_p9), %s1140_s28, 6  ;;  %s541_s15 = scalar_lea.hbm (!%p223_p9), %s1236_s5, %s681_s11 }
  0x15   : > { %s1144_s9 = scalar_lea.vmem (!%p223_p9), [#allocation4], %s661_s29  ;;  %s1147_s10 = scalar_lea.vmem (!%p223_p9), [#allocation2], %s661_s29 }
  0x16   : > { %s558_s17 = scalar_lea.hbm (!%p223_p9), %s1237_s6, %s681_s11  ;;  %s542_s18 = sshll.u32 (!%p223_p9), %s1147_s10, 4  ;;  %s543_s18 = int_to_ptr.vmem [resolvable:$true] %s542_s18 }
  0x17   : > { %v280_v0 = vld [vmem:[%s1234_s3 + $0x38] sm:$0xff]  ;;  %v279_v1 = vld [vmem:[%s1234_s3 + $0x30] sm:$0xff]  ;;  %v278_v2 = vld [vmem:[%s1234_s3 + $0x28] sm:$0xff]  ;;  %s1247_s13 = smov (!%p258_p10, %s663_s13), 31  ;;  %vm285_vm0 = vcmask 523264   ;;  %s544_s19 = sshll.u32 %s541_s15, 4  ;;  %s545_s19 = int_to_ptr.hbm [resolvable:$true] %s544_s19 }
  0x18   : > { %318 = vmatpush.msra.mxu0 %v280_v0  ;;  %683 = vmatpush.msra.mxu3 %v280_v0  ;;  %v277_v3 = vld [vmem:[%s1234_s3 + $0x20] sm:$0xff]  ;;  %v276_v4 = vld [vmem:[%s1234_s3 + $0x18] sm:$0xff]  ;;  %s664_s20 = sshll.u32 %s1247_s13, 3  ;;  %v275_v5 = vld [vmem:[%s1234_s3 + $0x10] sm:$0xff]  ;;  %s525_s26 = scalar_lea.sflag [#allocation3], %s1140_s28 }
  0x19   : > { %v274_v6 = vld [vmem:[%s1234_s3 + $0x8] sm:$0xff]  ;;  %s1025_s12 = scalar_lea.vmem %s1233_s2, %s664_s20  ;;  %v273_v7 = vld [vmem:[%s1234_s3] sm:$0xff]  ;;  %v366_v10 = vld [vmem:[%s1241_s0 + $0x78] sm:$0xff]  ;;  %s561_s20 = sshll.u32 %s558_s17, 4  ;;  %s1186_s20 = int_to_ptr.hbm [resolvable:$true] %s561_s20 }
  0x1a   : > { %319 = vmatpush.msra.mxu0 %v279_v1  ;;  %684 = vmatpush.msra.mxu3 %v279_v1  ;;  %v265_v8 = vld [vmem:[%s1025_s12] sm:$0xff]  ;;  %v270_v9 = vld [vmem:[%s1025_s12 + $0x28] sm:$0xff]  ;;  %v365_v11 = vld [vmem:[%s1241_s0 + $0x70] sm:$0xff]  ;;  %s833_s29 = sshra.s32 %s545_s19, 4  ;;  %s839_s15 = scalar_lea.hbm %s1236_s5, 256  ;;  %s834_s29 = int_to_ptr.hbm [resolvable:$true] %s833_s29 }
  0x1b   : > { %371 = vmatpush.msra.mxu1 %v366_v10  ;;  %691 = vmatpush.msra.mxu2 %v366_v10  ;;  %v364_v12 = vld [vmem:[%s1241_s0 + $0x68] sm:$0xff]  ;;  %v363_v13 = vld [vmem:[%s1241_s0 + $0x60] sm:$0xff]  ;;  %v271_v15 = vld [vmem:[%s1025_s12 + $0x30] sm:$0xff]  ;;  %s835_s11 = scalar_lea.hbm %s834_s29, 64  ;;  %p840_p0 = scmp.lt.s32.totalorder %s834_s29, %s1236_s5 }
  0x1c   : > { %320 = vmatpush.msra.mxu0 %v278_v2  ;;  %685 = vmatpush.msra.mxu3 %v278_v2  ;;  %v266_v14 = vld [vmem:[%s1025_s12 + $0x8] sm:$0xff]  ;;  %v362_v16 = vld [vmem:[%s1241_s0 + $0x58] sm:$0xff]  ;;  %v361_v17 = vld [vmem:[%s1241_s0 + $0x50] sm:$0xff]  ;;  %p836_p11 = scmp.ne.s32.totalorder %s834_s29, %s835_s11  ;;  %p841_p1 = scmp.lt.s32.totalorder %s839_s15, %s835_s11 }
  0x1d   : > { %372 = vmatpush.msra.mxu1 %v365_v11  ;;  %693 = vmatpush.msra.mxu2 %v365_v11  ;;  %v360_v18 = vld [vmem:[%s1241_s0 + $0x48] sm:$0xff]  ;;  %v359_v19 = vld [vmem:[%s1241_s0 + $0x40] sm:$0xff]  ;;  %v267_v20 = vld [vmem:[%s1025_s12 + $0x10] sm:$0xff] }
  0x1e   : > { %321 = vmatpush.msra.mxu0 %v277_v3  ;;  %686 = vmatpush.msra.mxu3 %v277_v3  ;;  %v272_v21 = vld [vmem:[%s1025_s12 + $0x38] sm:$0xff]  ;;  %v357_v23 = vld [vmem:[%s1241_s0 + $0x30] sm:$0xff]  ;;  %v356_v24 = vld [vmem:[%s1241_s0 + $0x28] sm:$0xff]  ;;  %p837_p12 = pnand %p836_p11, %p990_p5  ;;  %p842_p2 = por %p841_p1, %p840_p0 }
  0x1f   : > { %373 = vmatpush.msra.mxu1 %v364_v12  ;;  %695 = vmatpush.msra.mxu2 %v364_v12  ;;  %v358_v22 = vld [vmem:[%s1241_s0 + $0x38] sm:$0xff]  ;;  %v355_v25 = vld [vmem:[%s1241_s0 + $0x20] sm:$0xff]  ;;  %v353_v28 = vld [vmem:[%s1241_s0 + $0x10] sm:$0xff] }
  0x20   : > { %322 = vmatpush.msra.mxu0 %v276_v4  ;;  %687 = vmatpush.msra.mxu3 %v276_v4  ;;  %v268_v26 = vld [vmem:[%s1025_s12 + $0x18] sm:$0xff]  ;;  %v269_v29 = vld [vmem:[%s1025_s12 + $0x20] sm:$0xff]  ;;  %v352_v30 = vld [vmem:[%s1241_s0 + $0x8] sm:$0xff]  ;;  %s559_s12 = sshll.u32 %s1144_s9, 4  ;;  %p838_p13 = pneg %p837_p12  ;;  %s1184_s12 = int_to_ptr.vmem [resolvable:$true] %s559_s12 }
  0x21   : > { %374 = vmatpush.msra.mxu1 %v363_v13  ;;  %697 = vmatpush.msra.mxu2 %v363_v13  ;;  %v354_v27 = vld [vmem:[%s1241_s0 + $0x18] sm:$0xff]  ;;  %v351_v31 = vld [vmem:[%s1241_s0] sm:$0xff] }
  0x22   : > { %323 = vmatpush.msra.mxu0 %v275_v5  ;;  %688 = vmatpush.msra.mxu3 %v275_v5  ;;  %v769_v32 = vld [vmem:[%s1235_s4] ss:$0 sm:$0xff]  ;;  %p843_p3 = pnand %p842_p2, %p838_p13 }
  0x23   : > { %375 = vmatpush.msra.mxu1 %v362_v16  ;;  %699 = vmatpush.msra.mxu2 %v362_v16  ;;  %v770_v49 = vld [vmem:[%s1232_s1] ss:$0 sm:$0xff] }
  0x24   : > { %324 = vmatpush.msra.mxu0 %v274_v6  ;;  %689 = vmatpush.msra.mxu3 %v274_v6 }
  0x25   : > { %376 = vmatpush.msra.mxu1 %v361_v17  ;;  %701 = vmatpush.msra.mxu2 %v361_v17 }
  0x26   : > { %325 = vmatpush.msra.mxu0 %v273_v7  ;;  %690 = vmatpush.msra.mxu3 %v273_v7 }
  0x27   : > { %665 = vmatmul.msk.f32.vlgmr.msra.gmra.mxu0 %vm285_vm0, %v265_v8  ;;  %670 = vmatmul.msk.f32.vlgmr.msra.gmra.mxu3 %vm285_vm0, %v270_v9 }
  0x28   : > { %692 = vmatpush.msrb.mxu3 %v366_v10  ;;  %377 = vmatpush.msra.mxu1 %v360_v18 }
  0x29   : > { %703 = vmatpush.msra.mxu2 %v360_v18 }
  0x2a   : > { %694 = vmatpush.msrb.mxu3 %v365_v11  ;;  %378 = vmatpush.msra.mxu1 %v359_v19 }
  0x2b   : > { %705 = vmatpush.msra.mxu2 %v359_v19 }
  0x2c   : > { %696 = vmatpush.msrb.mxu3 %v364_v12  ;;  %379 = vmatpush.msra.mxu1 %v358_v22 }
  0x2d   : > { %707 = vmatpush.msra.mxu2 %v358_v22 }
  0x2e   : > { %698 = vmatpush.msrb.mxu3 %v363_v13  ;;  %380 = vmatpush.msra.mxu1 %v357_v23 }
  0x2f   : > { %666 = vmatmul.msk.f32.gmra.mxu0 %vm285_vm0, %v266_v14  ;;  %671 = vmatmul.msk.f32.gmra.mxu3 %vm285_vm0, %v271_v15 }
  0x30   : > { %700 = vmatpush.msrb.mxu3 %v362_v16  ;;  %709 = vmatpush.msra.mxu2 %v357_v23 }
  0x31   : > { %381 = vmatpush.msra.mxu1 %v356_v24 }
  0x32   : > { %702 = vmatpush.msrb.mxu3 %v361_v17  ;;  %711 = vmatpush.msra.mxu2 %v356_v24 }
  0x33   : > { %382 = vmatpush.msra.mxu1 %v355_v25 }
  0x34   : > { %704 = vmatpush.msrb.mxu3 %v360_v18  ;;  %713 = vmatpush.msra.mxu2 %v355_v25 }
  0x35   : > { %383 = vmatpush.msra.mxu1 %v354_v27 }
  0x36   : > { %706 = vmatpush.msrb.mxu3 %v359_v19  ;;  %715 = vmatpush.msra.mxu2 %v354_v27 }
  0x37   : > { %667 = vmatmul.msk.f32.gmra.mxu0 %vm285_vm0, %v267_v20  ;;  %672 = vmatmul.msk.f32.gmra.mxu3 %vm285_vm0, %v272_v21 }
  0x38   : > { %708 = vmatpush.msrb.mxu3 %v358_v22  ;;  %384 = vmatpush.msra.mxu1 %v353_v28 }
  0x39   : > { %717 = vmatpush.msra.mxu2 %v353_v28 }
  0x3a   : > { %710 = vmatpush.msrb.mxu3 %v357_v23  ;;  %385 = vmatpush.msra.mxu1 %v352_v30 }
  0x3b   : > { %719 = vmatpush.msra.mxu2 %v352_v30 }
  0x3c   : > { %712 = vmatpush.msrb.mxu3 %v356_v24  ;;  %386 = vmatpush.msra.mxu1 %v351_v31 }
  0x3d   : > { %721 = vmatpush.msra.mxu2 %v351_v31 }
  0x3e   : > { %714 = vmatpush.msrb.mxu3 %v355_v25 }
  0x3f   : > { %668 = vmatmul.msk.f32.gmra.mxu0 %vm285_vm0, %v268_v26 }
  0x40   : > { %716 = vmatpush.msrb.mxu3 %v354_v27 }
  0x42   : > { %718 = vmatpush.msrb.mxu3 %v353_v28 }
  0x44   : > { %720 = vmatpush.msrb.mxu3 %v352_v30 }
  0x46   : > { %722 = vmatpush.msrb.mxu3 %v351_v31 }
  0x47   : > { %669 = vmatmul.msk.f32.gmra.mxu0 %vm285_vm0, %v269_v29 }
  0xa4   : > { %v327_v33 = vpop.f32.mrf.mxu0 }
  0xa5   : > { %v328_v34 = vadd.f32 %v769_v32, %v327_v33 }
  0xa7   : > { %387 = vmatmul.f32.vlgmr.msra.gmra.mxu1 %v328_v34 }
  0xaa   : > { %v342_v35 = vpop.f32.mrf.mxu3 }
  0xab   : > { %v343_v47 = vadd.f32 %v769_v32, %v342_v35 }
  0xac   : > { %v330_v36 = vpop.f32.mrf.mxu0 }
  0xad   : > { %v331_v37 = vadd.f32 %v769_v32, %v330_v36 }
  0xaf   : > { %390 = vmatmul.f32.gmra.mxu1 %v331_v37 }
  0xb2   : > { %v345_v38 = vpop.f32.mrf.mxu3 }
  0xb3   : > { %v346_v48 = vadd.f32 %v769_v32, %v345_v38 }
  0xb4   : > { %v333_v39 = vpop.f32.mrf.mxu0 }
  0xb5   : > { %v334_v40 = vadd.f32 %v769_v32, %v333_v39 }
  0xb7   : > { %393 = vmatmul.f32.gmra.mxu1 %v334_v40 }
  0xba   : > { %v348_v41 = vpop.f32.mrf.mxu3 }
  0xbb   : > { %v349_v42 = vadd.f32 %v769_v32, %v348_v41 }
  0xbc   : > { %v336_v43 = vpop.f32.mrf.mxu0 }
  0xbd   : > { %v337_v44 = vadd.f32 %v769_v32, %v336_v43  ;;  %408 = vmatmul.f32.vlgmr.msrb.gmra.mxu3 %v349_v42 }
  0xbf   : > { %396 = vmatmul.f32.vlgmr.msra.gmra.mxu2 %v337_v44 }
  0xc4   : > { %v339_v45 = vpop.f32.mrf.mxu0 }
  0xc5   : > { %v340_v46 = vadd.f32 %v769_v32, %v339_v45 }
  0xc7   : > { %399 = vmatmul.f32.gmra.mxu2 %v340_v46 }
  0xcf   : > { %402 = vmatmul.f32.gmra.mxu2 %v343_v47 }
  0xd7   : > { %405 = vmatmul.f32.gmra.mxu2 %v346_v48 }
 0x124   : > { %v388_v50 = vpop.f32.mrf.mxu1 }
 0x125   : > { %v389_v51 = vadd.f32 %v770_v49, %v388_v50 }
 0x127   : > { %412 = vmax.xlane.f32.xlu0 %v389_v51 }
 0x12c   : > { %v391_v52 = vpop.f32.mrf.mxu1 }
 0x12d   : > { %v392_v53 = vadd.f32 %v770_v49, %v391_v52 }
 0x12f   : > { %414 = vmax.xlane.f32.xlu0 %v392_v53 }
 0x134   : > { %v394_v54 = vpop.f32.mrf.mxu1 }
 0x135   : > { %v395_v55 = vadd.f32 %v770_v49, %v394_v54 }
 0x137   : > { %416 = vmax.xlane.f32.xlu1 %v395_v55 }
 0x140   : > { %v409_v58 = vpop.f32.mrf.mxu3 }
 0x141   : > { %v410_v59 = vadd.f32 %v770_v49, %v409_v58 }
 0x142   : > { %v397_v56 = vpop.f32.mrf.mxu2 }
 0x143   : > { %v398_v57 = vadd.f32 %v770_v49, %v397_v56 }
 0x145   : > { %418 = vmax.xlane.f32.xlu1 %v398_v57 }
 0x14a   : > { %v400_v60 = vpop.f32.mrf.mxu2 }
 0x14b   : > { %v401_v61 = vadd.f32 %v770_v49, %v400_v60 }
 0x14d   : > { %420 = vmax.xlane.f32.xlu2 %v401_v61  ;;  %426 = vmax.xlane.f32.xlu1 %v410_v59 }
 0x152   : > { %v403_v62 = vpop.f32.mrf.mxu2 }
 0x153   : > { %v404_v63 = vadd.f32 %v770_v49, %v403_v62 }
 0x155   : > { %422 = vmax.xlane.f32.xlu2 %v404_v63 }
 0x15a   : > { %v406_v0 = vpop.f32.mrf.mxu2 }
 0x15b   : > { %v407_v1 = vadd.f32 %v770_v49, %v406_v0 }
 0x15d   : > { %424 = vmax.xlane.f32.xlu0 %v407_v1 }
 0x19a   : > { %v413_v2 = vpop.xlane.xlu0 %412 }
 0x19b   : > { %v1100_v3 = vsub.f32 %v389_v51, %v413_v2 }
 0x19d   : > { %v436_v4 = vmul.f32 1.442695, %v1100_v3 }
 0x19f   : > { %771 = vpow2.f32 %v436_v4 }
 0x1a2   : > { %v415_v5 = vpop.xlane.xlu0 %414 }
 0x1a3   : > { %v1103_v6 = vsub.f32 %v392_v53, %v415_v5 }
 0x1a5   : > { %v772_v7 = vpop.eup %771  ;;  %v438_v8 = vmul.f32 1.442695, %v1103_v6 }
 0x1a6   : > { %452 = vadd.xlane.f32.xlu2 %v772_v7 }
 0x1a7   : > { %773 = vpow2.f32 %v438_v8 }
 0x1aa   : > { %v417_v9 = vpop.xlane.xlu1 %416 }
 0x1ab   : > { %v1106_v10 = vsub.f32 %v395_v55, %v417_v9 }
 0x1ad   : > { %v774_v11 = vpop.eup %773  ;;  %v440_v12 = vmul.f32 1.442695, %v1106_v10 }
 0x1ae   : > { %454 = vadd.xlane.f32.xlu0 %v774_v11 }
 0x1af   : > { %775 = vpow2.f32 %v440_v12 }
 0x1b5   : > { %v776_v13 = vpop.eup %775 }
 0x1b6   : > { %456 = vadd.xlane.f32.xlu1 %v776_v13 }
 0x1b8   : > { %v419_v14 = vpop.xlane.xlu1 %418 }
 0x1b9   : > { %v1109_v15 = vsub.f32 %v398_v57, %v419_v14 }
 0x1bb   : > { %v442_v16 = vmul.f32 1.442695, %v1109_v15 }
 0x1bd   : > { %777 = vpow2.f32 %v442_v16 }
 0x1c0   : > { %v421_v17 = vpop.xlane.xlu2 %420  ;;  %v427_v19 = vpop.xlane.xlu1 %426 }
 0x1c1   : > { %v1112_v18 = vsub.f32 %v401_v61, %v421_v17  ;;  %v1117_v22 = vsub.f32 %v410_v59, %v427_v19 }
 0x1c3   : > { %v1114_v20 = vpop.eup %777  ;;  %v444_v21 = vmul.f32 1.442695, %v1112_v18  ;;  %v450_v23 = vmul.f32 1.442695, %v1117_v22 }
 0x1c4   : > { %458 = vadd.xlane.f32.xlu2 %v1114_v20 }
 0x1c5   : > { %779 = vpow2.f32 %v444_v21 }
 0x1c6   : > { %781 = vpow2.f32 %v450_v23 }
 0x1c8   : > { %v423_v24 = vpop.xlane.xlu2 %422 }
 0x1c9   : > { %v1121_v25 = vsub.f32 %v404_v63, %v423_v24 }
 0x1cb   : > { %v1123_v26 = vpop.eup %779  ;;  %v446_v27 = vmul.f32 1.442695, %v1121_v25 }
 0x1cc   : > { %460 = vadd.xlane.f32.xlu0 %v1123_v26  ;;  %v1129_v30 = vpop.eup %781 }
 0x1cd   : > { %783 = vpow2.f32 %v446_v27 }
 0x1d0   : > { %v425_v28 = vpop.xlane.xlu0 %424 }
 0x1d1   : > { %v1127_v29 = vsub.f32 %v407_v1, %v425_v28 }
 0x1d3   : > { %v1131_v31 = vpop.eup %783  ;;  %v448_v32 = vmul.f32 1.442695, %v1127_v29 }
 0x1d4   : > { %462 = vadd.xlane.f32.xlu1 %v1131_v31  ;;  %466 = vadd.xlane.f32.xlu0 %v1129_v30 }
 0x1d5   : > { %785 = vpow2.f32 %v448_v32 }
 0x1db   : > { %v1136_v33 = vpop.eup %785 }
 0x1dc   : > { %464 = vadd.xlane.f32.xlu2 %v1136_v33 }
 0x219   : > { %v453_v34 = vpop.xlane.xlu2 %452 }
 0x21a   : > { %787 = vlog2.f32 %v453_v34 }
 0x21b   : > { %789 = vrcp.f32 %v453_v34 }
 0x220   : > { %v788_v35 = vpop.eup %787 }
 0x221   : > { %v790_v36 = vpop.eup %789  ;;  %v469_v37 = vmul.f32 0.6931472, %v788_v35  ;;  %v455_v38 = vpop.xlane.xlu0 %454 }
 0x222   : > { %v508_v39 = vmul.f32 %v790_v36, %v772_v7  ;;  %791 = vlog2.f32 %v455_v38 }
 0x223   : > { %v484_v40 = vsub.f32 %v1100_v3, %v469_v37  ;;  %793 = vrcp.f32 %v455_v38 }
 0x224   : > { %516 = vst [vmem:[%s1144_s9] sm:$0xff] %v508_v39 }
 0x225   : > { %492 = vst [vmem:[%s1147_s10] sm:$0xff] %v484_v40 }
 0x228   : > { %v792_v41 = vpop.eup %791 }
 0x229   : > { %v794_v42 = vpop.eup %793  ;;  %v471_v43 = vmul.f32 0.6931472, %v792_v41  ;;  %v457_v44 = vpop.xlane.xlu1 %456 }
 0x22a   : > { %v509_v45 = vmul.f32 %v794_v42, %v774_v11  ;;  %795 = vlog2.f32 %v457_v44 }
 0x22b   : > { %v485_v46 = vsub.f32 %v1103_v6, %v471_v43  ;;  %797 = vrcp.f32 %v457_v44 }
 0x22c   : > { %517 = vst [vmem:[%s1144_s9 + $0x8] sm:$0xff] %v509_v45 }
 0x22d   : > { %493 = vst [vmem:[%s1147_s10 + $0x8] sm:$0xff] %v485_v46 }
 0x230   : > { %v796_v47 = vpop.eup %795 }
 0x231   : > { %v798_v48 = vpop.eup %797  ;;  %v473_v49 = vmul.f32 0.6931472, %v796_v47 }
 0x232   : > { %v510_v50 = vmul.f32 %v798_v48, %v776_v13 }
 0x233   : > { %v486_v51 = vsub.f32 %v1106_v10, %v473_v49 }
 0x234   : > { %518 = vst [vmem:[%s1144_s9 + $0x10] sm:$0xff] %v510_v50 }
 0x235   : > { %494 = vst [vmem:[%s1147_s10 + $0x10] sm:$0xff] %v486_v51 }
 0x237   : > { %v459_v52 = vpop.xlane.xlu2 %458 }
 0x238   : > { %799 = vlog2.f32 %v459_v52 }
 0x239   : > { %801 = vrcp.f32 %v459_v52 }
 0x23e   : > { %v800_v53 = vpop.eup %799 }
 0x23f   : > { %v802_v54 = vpop.eup %801  ;;  %v475_v55 = vmul.f32 0.6931472, %v800_v53  ;;  %v461_v56 = vpop.xlane.xlu0 %460 }
 0x240   : > { %v511_v57 = vmul.f32 %v802_v54, %v1114_v20  ;;  %803 = vlog2.f32 %v461_v56 }
 0x241   : > { %v487_v58 = vsub.f32 %v1109_v15, %v475_v55  ;;  %805 = vrcp.f32 %v461_v56 }
 0x242   : > { %519 = vst [vmem:[%s1144_s9 + $0x18] sm:$0xff] %v511_v57 }
 0x243   : > { %495 = vst [vmem:[%s1147_s10 + $0x18] sm:$0xff] %v487_v58 }
 0x246   : > { %v804_v59 = vpop.eup %803 }
 0x247   : > { %v806_v60 = vpop.eup %805  ;;  %v477_v61 = vmul.f32 0.6931472, %v804_v59  ;;  %v463_v62 = vpop.xlane.xlu1 %462 }
 0x248   : > { %v467_v63 = vpop.xlane.xlu0 %466  ;;  %v512_v0 = vmul.f32 %v806_v60, %v1123_v26  ;;  %807 = vlog2.f32 %v463_v62 }
 0x249   : > { %v488_v1 = vsub.f32 %v1112_v18, %v477_v61  ;;  %809 = vrcp.f32 %v463_v62 }
 0x24a   : > { %520 = vst [vmem:[%s1144_s9 + $0x20] sm:$0xff] %v512_v0  ;;  %811 = vlog2.f32 %v467_v63 }
 0x24b   : > { %496 = vst [vmem:[%s1147_s10 + $0x20] sm:$0xff] %v488_v1  ;;  %813 = vrcp.f32 %v467_v63 }
 0x24e   : > { %v808_v2 = vpop.eup %807 }
 0x24f   : > { %v810_v3 = vpop.eup %809  ;;  %v479_v4 = vmul.f32 0.6931472, %v808_v2  ;;  %v465_v5 = vpop.xlane.xlu2 %464 }
 0x250   : > { %v812_v6 = vpop.eup %811  ;;  %v513_v7 = vmul.f32 %v810_v3, %v1131_v31  ;;  %815 = vlog2.f32 %v465_v5 }
 0x251   : > { %v814_v8 = vpop.eup %813  ;;  %v489_v9 = vsub.f32 %v1121_v25, %v479_v4  ;;  %v483_v10 = vmul.f32 0.6931472, %v812_v6  ;;  %817 = vrcp.f32 %v465_v5 }
 0x252   : > { %521 = vst [vmem:[%s1144_s9 + $0x28] sm:$0xff] %v513_v7  ;;  %v515_v11 = vmul.f32 %v814_v8, %v1129_v30 }
 0x253   : > { %497 = vst [vmem:[%s1147_s10 + $0x28] sm:$0xff] %v489_v9  ;;  %v491_v12 = vsub.f32 %v1117_v22, %v483_v10 }
 0x254   : > { %523 = vst [vmem:[%s1144_s9 + $0x38] sm:$0xff] %v515_v11 }
 0x255   : > { %499 = vst [vmem:[%s1147_s10 + $0x38] sm:$0xff] %v491_v12 }
 0x256   : > { %v816_v13 = vpop.eup %815 }
 0x257   : > { %v818_v14 = vpop.eup %817  ;;  %v481_v15 = vmul.f32 0.6931472, %v816_v13 }
 0x258   : > { %v514_v16 = vmul.f32 %v818_v14, %v1136_v33 }
 0x259   : > { %v490_v17 = vsub.f32 %v1127_v29, %v481_v15 }
 0x25a   : > { %522 = vst [vmem:[%s1144_s9 + $0x30] sm:$0xff] %v514_v16 }
 0x25b   : > { %498 = vst [vmem:[%s1147_s10 + $0x30] sm:$0xff] %v490_v17 }
 0x25c   : > { %846 = shalt.err (!%p843_p3)
}
 0x25d   : > { %s915_s9 = smov 128   ;;  %s916_s10 = smov 8  }
 0x25e   : > { %723 = dma.vmem_to_hbm [thread:$0]  (%p990_p5), %s543_s18, 1024, %s545_s19, %s525_s26, %s915_s9, %s915_s9, %s916_s10  }
 0x25f   : > { %s530_s17 = scalar_lea.sflag [#allocation5], %s1140_s28  ;;  %s861_s0 = sshra.s32 %s1186_s20, 4  ;;  %s862_s0 = int_to_ptr.hbm [resolvable:$true] %s861_s0 }
 0x260   : > { %s863_s13 = scalar_lea.hbm %s862_s0, 64  ;;  %s867_s14 = scalar_lea.hbm %s1237_s6, 256 }
 0x261   : > { %p864_p4 = scmp.ne.s32.totalorder %s862_s0, %s863_s13  ;;  %p868_p9 = scmp.lt.s32.totalorder %s862_s0, %s1237_s6 }
 0x262   : > { %p869_p10 = scmp.lt.s32.totalorder %s867_s14, %s863_s13 }
 0x263   : > { %p865_p7 = pnand %p864_p4, %p990_p5 }
 0x264   : > { %p870_p11 = por %p869_p10, %p868_p9 }
 0x265   : > { %p866_p8 = pneg %p865_p7 }
 0x267   : > { %p871_p12 = pnand %p870_p11, %p866_p8 }
 0x269   : > { %874 = shalt.err (!%p871_p12)
}
 0x26a   : > { %724 = dma.vmem_to_hbm [thread:$0]  (%p990_p5), %s1184_s12, 1024, %s1186_s20, %s530_s17, %s915_s9, %s915_s9, %s916_s10  }
 0x26b PF: > { %p734_p13 = scmp.ge.s32.totalorder %s913_s24, 2  ;;  %s576_s28 = sand.u32 1, %s901_s21  }
 0x26c   : > { %s577_s18 = scalar_lea.sflag [#allocation3], %s576_s28 }
 0x26d   : > { %p728_p0 = pnand %p734_p13, %p994_p6 }
 0x26f   : > { %p729_p1 = pneg %p728_p0 }
 0x271   : > { %892 = dma.done.wait (%p729_p1), %s577_s18, 1024  }
 0x272   : > { %894 = vsyncadd (%p729_p1), %s577_s18, 4294966272  ;;  %s587_s0 = scalar_lea.sflag [#allocation5], %s576_s28 }
 0x273   : > { %896 = dma.done.wait (%p729_p1), %s587_s0, 1024  }
 0x274   : > { %898 = vsyncadd (%p729_p1), %s587_s0, 4294966272  ;;  %p20_p5 = scmp.ge.s32.totalorder %s977_s27, 6   ;;  %s1242_s21 = smov %s905_s22 }
 0x275   : > { %s1243_s22 = smov %s909_s23  ;;  %s1244_s23 = smov %s988_s30 }
 0x276   : > { %s1245_s24 = smov %s977_s27  ;;  %22 = sbr.rel (!%p20_p5) target bundleno = 7 (0x7), region = 92 }
 0x27b   :  { %593 = vsyncpa [#allocation3], 1 }
 0x27c   :  { %595 = vsyncpa [#allocation3 + $0x1], 1 }
 0x27d   :  { %596 = vsyncpa [#allocation5], 1 }
 0x27e   :  { %598 = vsyncpa [#allocation5 + $0x1], 1 }

</bundles_post_ra>
